<compile_context>
chip_gen: v7x
topology: tpu7x:2x2x1
jax: 0.10.0
libtpu: 0.0.40
codegen_flags: <defaults>
</compile_context>

<pallas_src>
import functools

import jax
import jax.numpy as jnp
from jax.experimental import pallas as pl
from jax.experimental.pallas import tpu as pltpu

_LANE = 128
_SUBLANE = 8
_MAX_BLOCK_ROWS = 4096     # 2 MiB per f32 block; safe on all generations


def _content_mse_kernel(x_ref, t_ref, acc_ref, *, block_rows, total_n, need_mask):
    """Accumulate per-lane partial sums of (x - t)^2 into an (8,128) output block."""
    c = pl.program_id(0)
    k = pl.program_id(1)

    @pl.when(k == 0)
    def _():
        acc_ref[...] = jnp.zeros_like(acc_ref)

    d = x_ref[...].astype(jnp.float32) - t_ref[...].astype(jnp.float32)
    d2 = d * d

    if need_mask:
        # Logical (unclamped) block index -> global flat element index; zero out
        # anything beyond the true element count (covers tail pad, partial edge
        # blocks, and fully out-of-range blocks whose DMA index was clamped).
        # int32 flat index is fine for any realistic feature-map size (< 2^31 elems).
        start_row = (c * pl.num_programs(1) + k) * block_rows
        row = jax.lax.broadcasted_iota(jnp.int32, d2.shape, 0) + start_row
        lane = jax.lax.broadcasted_iota(jnp.int32, d2.shape, 1)
        d2 = jnp.where(row * _LANE + lane < total_n, d2, 0.0)

    # Fold the (block_rows, 128) tile down to one vreg of partial sums: pure VPU adds
    # between native (8,128) sub-tiles, no per-step cross-lane reduction.
    acc_ref[...] += jnp.sum(
        d2.reshape(block_rows // _SUBLANE, _SUBLANE, _LANE), axis=0)


def _to_slab(x):
    """View a tensor as a lane-dense [rows, 128] slab with rows % 8 == 0."""
    flat = x.reshape(-1)
    n = flat.shape[0]
    chunk = _SUBLANE * _LANE  # 1024
    rem = n % chunk
    if rem:
        # TODO(synk): rare tail case materializes one padded copy; in-kernel masking
        # keyed on the true element count makes the padded values irrelevant.
        flat = jnp.pad(flat, (0, chunk - rem))
    return flat.reshape(-1, _LANE)


@jax.jit
def content_loss_forward(input_nchw, target_nchw, weight):
    """Returns (output, loss).

    output = input (passthrough, as in the PyTorch module)
    loss   = MSE(input * weight, target * weight)  ==  weight^2 * mean((input-target)^2)
    """
    total_n = input_nchw.size  # mean is over the true element count

    x2d = _to_slab(input_nchw)
    t2d = _to_slab(target_nchw)
    rows = x2d.shape[0]

    block_rows = min(_MAX_BLOCK_ROWS, rows)          # rows is a multiple of 8
    n_blocks = pl.cdiv(rows, block_rows)
    # Only split across TensorCores when there is real work for both of them.
    num_cores = 2 if n_blocks >= 2 else 1
    bpc = pl.cdiv(n_blocks, num_cores)               # blocks per core
    # Does the logical grid footprint cover exactly the true elements?
    need_mask = (num_cores * bpc * block_rows * _LANE) != total_n

    def in_map(c, k):
        # Clamp the DMA'd block index so out-of-range logical blocks just re-read a
        # valid block; the in-kernel mask (computed from the *logical* index) zeroes
        # their contribution.
        return (jnp.minimum(c * bpc + k, n_blocks - 1), 0)

    kernel = functools.partial(
        _content_mse_kernel,
        block_rows=block_rows,
        total_n=total_n,
        need_mask=need_mask,
    )

    partials = pl.pallas_call(
        kernel,
        out_shape=jax.ShapeDtypeStruct((num_cores, _SUBLANE, _LANE), jnp.float32),
        grid_spec=pltpu.PrefetchScalarGridSpec(
            num_scalar_prefetch=0,
            grid=(num_cores, bpc),
            in_specs=[
                pl.BlockSpec((block_rows, _LANE), in_map),   # input tile
                pl.BlockSpec((block_rows, _LANE), in_map),   # target tile
            ],
            # Per-core (8,128) partial-sum block, resident across the reduction axis.
            out_specs=pl.BlockSpec((None, _SUBLANE, _LANE), lambda c, k: (c, 0, 0)),
        ),
        compiler_params=pltpu.CompilerParams(
            dimension_semantics=("parallel", "arbitrary"),
        ),
    )(x2d, t2d)

    w = jnp.asarray(weight, jnp.float32)
    loss = (w * w) * jnp.sum(partials) / jnp.float32(total_n)

    # forward() returns the input unchanged (self.output = input)
    return input_nchw, loss


if __name__ == "__main__":
    key = jax.random.PRNGKey(0)
    k_in, k_tgt = jax.random.split(key)

    # Small NCHW shapes consistent with conv feature maps.
    N, C, H, W = 2, 4, 16, 16
    weight = 0.75

    input_img = jax.random.normal(k_in, (N, C, H, W), dtype=jnp.float32)
    target_feat = jax.random.normal(k_tgt, (N, C, H, W), dtype=jnp.float32)

    output, loss = content_loss_forward(input_img, target_feat, weight)
    output, loss = jax.block_until_ready((output, loss))

    # Reference check against plain-JAX MSE (matches nn.MSELoss default 'mean').
    ref_loss = jnp.mean((input_img * weight - target_feat * weight) ** 2)
    assert jnp.allclose(loss, ref_loss, rtol=1e-5, atol=1e-6), (loss, ref_loss)
    assert jnp.array_equal(output, input_img)

    print("KERNEL_OK")
</pallas_src>

<mosaic_0001>
module attributes {stable_mosaic.version = 11 : i64} {
  func.func @_content_mse_kernel(%arg0: i32, %arg1: i32, %arg2: memref<16x128xf32, #tpu.memory_space<vmem>>, %arg3: memref<16x128xf32, #tpu.memory_space<vmem>>, %arg4: memref<1x8x128xf32, #tpu.memory_space<vmem>>) attributes {dimension_semantics = [#tpu.dimension_semantics<parallel>, #tpu.dimension_semantics<arbitrary>], iteration_bounds = array<i64: 1, 1>, scalar_prefetch = 0 : i64, scratch_operands = 0 : i64, tpu.core_type = #tpu.core_type<tc>, window_params = [{transform_indices = @transform_0, window_bounds = array<i64: 16, 128>}, {transform_indices = @transform_1, window_bounds = array<i64: 16, 128>}, {transform_indices = @transform_2, window_bounds = array<i64: 1, 8, 128>}]} {
    %c0_i32 = arith.constant 0 : i32
    %0 = arith.cmpi eq, %arg1, %c0_i32 : i32
    %1 = arith.extui %0 : i1 to i32
    %c0_i32_0 = arith.constant 0 : i32
    %2 = arith.cmpi ne, %1, %c0_i32_0 : i32
    scf.if %2 {
      %cst_10 = arith.constant 0.000000e+00 : f32
      %15 = vector.broadcast %cst_10 : f32 to vector<8x128xf32>
      %c0_11 = arith.constant 0 : index
      %c0_12 = arith.constant 0 : index
      %c0_13 = arith.constant 0 : index
      %16 = vector.load %arg4[%c0_11, %c0_12, %c0_13] : memref<1x8x128xf32, #tpu.memory_space<vmem>>, vector<1x8x128xf32>
      %17 = vector.shape_cast %16 : vector<1x8x128xf32> to vector<8x128xf32>
      %18 = vector.shape_cast %15 : vector<8x128xf32> to vector<1x8x128xf32>
      tpu.vector_store %arg4[%c0_11, %c0_12, %c0_13], %18 {strides = array<i32>} : memref<1x8x128xf32, #tpu.memory_space<vmem>>, vector<1x8x128xf32>,
    } else {
    }
    %c0 = arith.constant 0 : index
    %c0_1 = arith.constant 0 : index
    %3 = vector.load %arg2[%c0, %c0_1] : memref<16x128xf32, #tpu.memory_space<vmem>>, vector<16x128xf32>
    %c0_2 = arith.constant 0 : index
    %c0_3 = arith.constant 0 : index
    %4 = vector.load %arg3[%c0_2, %c0_3] : memref<16x128xf32, #tpu.memory_space<vmem>>, vector<16x128xf32>
    %5 = arith.subf %3, %4 : vector<16x128xf32>
    %6 = arith.mulf %5, %5 : vector<16x128xf32>
    %c0_4 = arith.constant 0 : index
    %c0_5 = arith.constant 0 : index
    %c0_6 = arith.constant 0 : index
    %7 = vector.load %arg4[%c0_4, %c0_5, %c0_6] : memref<1x8x128xf32, #tpu.memory_space<vmem>>, vector<1x8x128xf32>
    %8 = vector.shape_cast %7 : vector<1x8x128xf32> to vector<8x128xf32>
    %9 = vector.shape_cast %6 : vector<16x128xf32> to vector<2x8x128xf32>
    %cst = arith.constant dense<0.000000e+00> : vector<8x128xf32>
    %10 = vector.multi_reduction <add>, %9, %cst [0] : vector<2x8x128xf32> to vector<8x128xf32>
    %11 = arith.addf %8, %10 : vector<8x128xf32>
    %c0_7 = arith.constant 0 : index
    %c0_8 = arith.constant 0 : index
    %c0_9 = arith.constant 0 : index
    %12 = vector.load %arg4[%c0_7, %c0_8, %c0_9] : memref<1x8x128xf32, #tpu.memory_space<vmem>>, vector<1x8x128xf32>
    %13 = vector.shape_cast %12 : vector<1x8x128xf32> to vector<8x128xf32>
    %14 = vector.shape_cast %11 : vector<8x128xf32> to vector<1x8x128xf32>
    tpu.vector_store %arg4[%c0_7, %c0_8, %c0_9], %14 {strides = array<i32>} : memref<1x8x128xf32, #tpu.memory_space<vmem>>, vector<1x8x128xf32>,
    return
  }
  func.func @transform_0(%arg0: i32, %arg1: i32) -> (i32, i32) {
    %c1_i32 = arith.constant 1 : i32
    %0 = arith.muli %arg0, %c1_i32 : i32
    %1 = arith.addi %0, %arg1 : i32
    %c0_i32 = arith.constant 0 : i32
    %2 = arith.minsi %1, %c0_i32 : i32
    %c0_i32_0 = arith.constant 0 : i32
    %c0_i32_1 = arith.constant 0 : i32
    return %2, %c0_i32_0 : i32, i32
  }
  func.func @transform_1(%arg0: i32, %arg1: i32) -> (i32, i32) {
    %c1_i32 = arith.constant 1 : i32
    %0 = arith.muli %arg0, %c1_i32 : i32
    %1 = arith.addi %0, %arg1 : i32
    %c0_i32 = arith.constant 0 : i32
    %2 = arith.minsi %1, %c0_i32 : i32
    %c0_i32_0 = arith.constant 0 : i32
    %c0_i32_1 = arith.constant 0 : i32
    return %2, %c0_i32_0 : i32, i32
  }
  func.func @transform_2(%arg0: i32, %arg1: i32) -> (i32, i32, i32) {
    %c0_i32 = arith.constant 0 : i32
    %c0_i32_0 = arith.constant 0 : i32
    %c0_i32_1 = arith.constant 0 : i32
    return %arg0, %c0_i32, %c0_i32_0 : i32, i32, i32
  }
}

</mosaic_0001>

<bundles_post_ra>
// kernel: content_loss_forward.1
= control target key start
LH: loop header
LB: loop body
LE: loop exit
PB: predicated region body
PF: predicated region fallthrough
CT: control target
= control target key end

     0   :  { %s139_s0 = inlined_call_operand.vmem [shape: f32[16,128], index: 0, kind: input, shape index: {}]   ;;  %s140_s1 = inlined_call_operand.vmem [shape: f32[16,128], index: 1, kind: input, shape index: {}]   ;;  %s141_s2 = inlined_call_operand.vmem [shape: f32[1,8,128], index: 2, kind: output, shape index: {}]  }
   0x1   :  { %v80_v0 = vld [vmem:[%s139_s0] sm:$0xff]  ;;  %v81_v1 = vld [vmem:[%s139_s0 + $0x8] sm:$0xff] }
   0x2   :  { %v82_v2 = vld [vmem:[%s140_s1] sm:$0xff]  ;;  %v83_v3 = vld [vmem:[%s140_s1 + $0x8] sm:$0xff] }
   0x3   :  { %v84_v4 = vsub.f32 %v80_v0, %v82_v2  ;;  %v85_v5 = vsub.f32 %v81_v1, %v83_v3 }
   0x5   :  { %v86_v6 = vmul.f32 %v84_v4, %v84_v4  ;;  %v87_v7 = vmul.f32 %v85_v5, %v85_v5 }
   0x7   :  { %v89_v8 = vadd.f32 %v87_v7, %v86_v6 }
   0x9   :  { %91 = vst [vmem:[%s141_s2] sm:$0xff] %v89_v8 }

</bundles_post_ra>
